<compile_context>
chip_gen: v5e
topology: v5e:2x2
jax: 0.10.0
libtpu: 0.0.40
codegen_flags: <defaults>
</compile_context>

<pallas_src>
from functools import partial

import jax
import jax.numpy as jnp
import numpy as np
from jax.experimental import pallas as pl
from jax.experimental.pallas import tpu as pltpu

# ----------------------------- model hyper-parameters -----------------------------
INPUT_DIM = 8                       # state dimension
HIDDEN_DIM = 32                     # hidden width of the coupling-net MLPs
N_FLOW = 3                          # n_layers_encoder
AUG_DIMS = [32, 16, 8]              # augmentation_dims (scaled down for a small test)
AUG_DIM = AUG_DIMS[-1]
LATENT_DIM = INPUT_DIM + AUG_DIM
K_SPLIT = INPUT_DIM // 2            # coupling split point
D2 = INPUT_DIM - K_SPLIT            # transformed half width
H2 = 2 * HIDDEN_DIM                 # fused conditioner hidden width (s + m)
SM2 = 2 * D2                        # fused conditioner output width (sig | mu)
FLIPS = [bool(i % 2) for i in range(N_FLOW)]   # stacked_NVP flip pattern
NEG_SLOPE = 0.01                    # nn.LeakyReLU default slope
OUT_DIM = INPUT_DIM + 2 * LATENT_DIM  # rows: [x_advanced | phi | phi_advanced] = 40

assert not FLIPS[0], "flow-0 / aug-0 fusion assumes the first coupling layer is unflipped"


def _ceil_to(n, m):
    return -(-n // m) * m


# ------------------------- static parameter-slab layout ----------------------------
# Single slab, feature-major (pre-transposed) weights.  Each block is 8-row aligned;
# weights occupy columns [0:cols], the bias (a column vector of length `rows`) lives
# at lane column BIAS_COL.  The whole slab is VMEM-resident across grid steps.
_W_COLS = 128
BIAS_COL = 64

W_OFFSETS = {}
_r = 0
# fused block: flow-0 first conditioner layer (zero-extended to INPUT_DIM input
# features) stacked on top of augmentation layer 0 -> one matmul on x in encode.
W_OFFSETS["fused0"] = (_r, H2 + AUG_DIMS[0], INPUT_DIM)
W_OFFSETS["flow0_w1"] = (_r, H2, K_SPLIT)          # alias into fused0 (used by decode)
_r += _ceil_to(H2 + AUG_DIMS[0], 8)
W_OFFSETS["flow0_w2"] = (_r, SM2, H2)
_r += _ceil_to(SM2, 8)
for _i in range(1, N_FLOW):
    W_OFFSETS[f"flow{_i}_w1"] = (_r, H2, K_SPLIT)
    _r += _ceil_to(H2, 8)
    W_OFFSETS[f"flow{_i}_w2"] = (_r, SM2, H2)
    _r += _ceil_to(SM2, 8)
_aug_io = [INPUT_DIM] + AUG_DIMS
for _j in range(1, len(AUG_DIMS)):
    W_OFFSETS[f"aug{_j}"] = (_r, _aug_io[_j + 1], _aug_io[_j])
    _r += _ceil_to(_aug_io[_j + 1], 8)
W_OFFSETS["K"] = (_r, LATENT_DIM, LATENT_DIM)
_r += _ceil_to(LATENT_DIM, 8)
W_ROWS = _ceil_to(_r, 8)                            # = 288

assert max(c for (_, _, c) in W_OFFSETS.values()) <= BIAS_COL < _W_COLS
assert all(r % 8 == 0 for (r, _, _) in W_OFFSETS.values())


# --------------------------------- Pallas kernel ----------------------------------
def aikae_kernel(x_ref, w_ref, out_ref):
    """AIKAE.forward for one batch tile; feature-major (features, batch) layout."""
    x = x_ref[...]                                   # (INPUT_DIM, bt)

    def matvec(name, act):
        r, rows, cols = W_OFFSETS[name]
        w = w_ref[r:r + rows, 0:cols]                # (rows, cols), pre-transposed
        b = w_ref[r:r + rows, BIAS_COL:BIAS_COL + 1]  # (rows, 1)
        return jnp.dot(w, act, preferred_element_type=jnp.float32) + b

    def leaky(h):
        return jnp.maximum(h, NEG_SLOPE * h)         # LeakyReLU (mul + max)

    def cond_second(i, h_pre):
        # second (block-diagonal) fused conditioner layer given pre-activation hidden
        o = matvec(f"flow{i}_w2", leaky(h_pre))      # (SM2, bt)
        return o[:D2, :], o[D2:, :]                  # sig, mu   (row slices)

    def conditioner(i, z1):
        return cond_second(i, matvec(f"flow{i}_w1", z1))

    # ---- encode: RealNVP forward pass (split-carry, flips are Python swaps) ----
    # fused matmul: flow-0 first conditioner layer + augmentation layer 0 on x.
    t = matvec("fused0", x)                          # (H2 + AUG_DIMS[0], bt)
    sig0, mu0 = cond_second(0, t[:H2, :])
    a1 = x[:K_SPLIT, :]
    a2 = x[K_SPLIT:, :] * jnp.exp(sig0) + mu0

    for i in range(1, N_FLOW):
        z1, z2 = (a2, a1) if FLIPS[i] else (a1, a2)
        sig, mu = conditioner(i, z1)
        o1, o2 = z1, z2 * jnp.exp(sig) + mu
        a1, a2 = (o2, o1) if FLIPS[i] else (o1, o2)

    # ---- augmentation encoder (layer 0 fused above; ReLU between layers only) ----
    a = t[H2:, :]
    if len(AUG_DIMS) > 1:
        a = jnp.maximum(a, 0.0)
    for j in range(1, len(AUG_DIMS)):
        a = matvec(f"aug{j}", a)
        if j < len(AUG_DIMS) - 1:
            a = jnp.maximum(a, 0.0)

    phi = jnp.concatenate([a1, a2, a], axis=0)       # (LATENT_DIM, bt)

    # ---- one step ahead: phi_adv^T = K @ phi^T (K packed as-is, no bias) ----
    rK, rowsK, colsK = W_OFFSETS["K"]
    phi_adv = jnp.dot(w_ref[rK:rK + rowsK, 0:colsK], phi,
                      preferred_element_type=jnp.float32)

    # ---- decode: inverse flow on the first input_dim latent rows ----
    c1, c2 = phi_adv[:K_SPLIT, :], phi_adv[K_SPLIT:INPUT_DIM, :]
    for i in reversed(range(N_FLOW)):
        z1, z2 = (c2, c1) if FLIPS[i] else (c1, c2)
        sig, mu = conditioner(i, z1)
        x1, x2 = z1, (z2 - mu) * jnp.exp(-sig)
        c1, c2 = (x2, x1) if FLIPS[i] else (x1, x2)

    # single lane-dense store: rows [x_advanced | phi | phi_advanced]
    out_ref[...] = jnp.concatenate([c1, c2, phi, phi_adv], axis=0)


# ----------------------------- parameter slab packing ------------------------------
def pack_params(flow_params, aug_params, K):
    slab = jnp.zeros((W_ROWS, _W_COLS), jnp.float32)

    def fuse_flow(p):
        sw1, sb1, sw2, sb2, mw1, mb1, mw2, mb2 = p
        # fused first layer (transposed): rows 0:H -> s hidden, H:2H -> m hidden
        w1t = jnp.concatenate([sw1, mw1], axis=1).T                    # (H2, K_SPLIT)
        b1 = jnp.concatenate([sb1.reshape(-1), mb1.reshape(-1)])       # (H2,)
        # fused second layer (block-diagonal, transposed): rows 0:D2 -> sig, D2: -> mu
        w2t = jnp.zeros((SM2, H2), jnp.float32)
        w2t = w2t.at[:D2, :HIDDEN_DIM].set(sw2.T)
        w2t = w2t.at[D2:, HIDDEN_DIM:].set(mw2.T)
        b2 = jnp.concatenate([sb2.reshape(-1), mb2.reshape(-1)])       # (SM2,)
        return w1t, b1, w2t, b2

    # fused block: flow-0 first layer (cols 0:K_SPLIT, rest zero) + aug layer 0
    w1t0, b10, w2t0, b20 = fuse_flow(flow_params[0])
    r, _, _ = W_OFFSETS["fused0"]
    slab = slab.at[r:r + H2, 0:K_SPLIT].set(w1t0)
    slab = slab.at[r:r + H2, BIAS_COL].set(b10)
    aug0_w, aug0_b = aug_params[0], aug_params[1]
    slab = slab.at[r + H2:r + H2 + AUG_DIMS[0], 0:INPUT_DIM].set(aug0_w.T)
    slab = slab.at[r + H2:r + H2 + AUG_DIMS[0], BIAS_COL].set(aug0_b.reshape(-1))
    r2, _, _ = W_OFFSETS["flow0_w2"]
    slab = slab.at[r2:r2 + SM2, 0:H2].set(w2t0)
    slab = slab.at[r2:r2 + SM2, BIAS_COL].set(b20)

    for i in range(1, N_FLOW):
        w1t, b1, w2t, b2 = fuse_flow(flow_params[i])
        r1, _, _ = W_OFFSETS[f"flow{i}_w1"]
        slab = slab.at[r1:r1 + H2, 0:K_SPLIT].set(w1t)
        slab = slab.at[r1:r1 + H2, BIAS_COL].set(b1)
        r2, _, _ = W_OFFSETS[f"flow{i}_w2"]
        slab = slab.at[r2:r2 + SM2, 0:H2].set(w2t)
        slab = slab.at[r2:r2 + SM2, BIAS_COL].set(b2)

    for j in range(1, len(AUG_DIMS)):
        wj, bj = aug_params[2 * j], aug_params[2 * j + 1]
        r, rows, cols = W_OFFSETS[f"aug{j}"]
        slab = slab.at[r:r + rows, 0:cols].set(wj.T)
        slab = slab.at[r:r + rows, BIAS_COL].set(bj.reshape(-1))

    rK, rowsK, colsK = W_OFFSETS["K"]
    slab = slab.at[rK:rK + rowsK, 0:colsK].set(K)    # phi_adv^T = K @ phi^T
    return slab


# ----------------------------------- wrapper ---------------------------------------
@partial(jax.jit, static_argnames=("batch_tile",))
def aikae_forward(x, flow_params, aug_params, K, batch_tile=None):
    B = x.shape[0]
    if batch_tile is None:
        # Large tiles amortize the ~0.35us per-step overhead; cap at 4096 (well inside
        # scoped VMEM on every generation) and aim for >= 2 grid steps so both
        # TensorCores are used on v7x.  Tile must be a multiple of 128 (lane axis).
        pB128 = _ceil_to(B, 128)
        batch_tile = max(128, min(4096, _ceil_to(max(pB128 // 2, 1), 128)))
    bt = _ceil_to(int(batch_tile), 128)
    pB = _ceil_to(B, bt)

    # feature-major input: (INPUT_DIM, batch), padded batch on the lane axis
    x_t = x.T
    if pB != B:
        x_t = jnp.pad(x_t, ((0, 0), (0, pB - B)))

    w_slab = pack_params(flow_params, aug_params, K)

    out = pl.pallas_call(
        aikae_kernel,
        out_shape=jax.ShapeDtypeStruct((OUT_DIM, pB), jnp.float32),
        grid_spec=pltpu.PrefetchScalarGridSpec(
            num_scalar_prefetch=0,
            grid=(pB // bt,),
            in_specs=[
                pl.BlockSpec((INPUT_DIM, bt), lambda i: (0, i)),     # x tile (feature-major)
                pl.BlockSpec((W_ROWS, _W_COLS), lambda i: (0, 0)),   # param slab (resident)
            ],
            out_specs=pl.BlockSpec((OUT_DIM, bt), lambda i: (0, i)),
        ),
        compiler_params=pltpu.CompilerParams(
            dimension_semantics=("parallel",)),
    )(x_t, w_slab)

    x_adv = out[:INPUT_DIM, :B].T
    phi = out[INPUT_DIM:INPUT_DIM + LATENT_DIM, :B].T
    phi_adv = out[INPUT_DIM + LATENT_DIM:, :B].T
    return x_adv, phi, phi_adv


# ------------------------- deterministic parameter init ----------------------------
def init_params(key):
    def lin(k, fan_in, fan_out, scale=0.2):
        kw, kb = jax.random.split(k)
        w = scale * jax.random.normal(kw, (fan_in, fan_out), jnp.float32)
        b = scale * jax.random.normal(kb, (1, fan_out), jnp.float32)
        return w, b

    keys = jax.random.split(key, N_FLOW * 4 + len(AUG_DIMS))
    ki = 0
    flow_params = []
    for _ in range(N_FLOW):
        sw1, sb1 = lin(keys[ki], K_SPLIT, HIDDEN_DIM); ki += 1
        sw2, sb2 = lin(keys[ki], HIDDEN_DIM, D2); ki += 1
        mw1, mb1 = lin(keys[ki], K_SPLIT, HIDDEN_DIM); ki += 1
        mw2, mb2 = lin(keys[ki], HIDDEN_DIM, D2); ki += 1
        flow_params.append((sw1, sb1, sw2, sb2, mw1, mb1, mw2, mb2))

    aug_params = []
    dims = [INPUT_DIM] + AUG_DIMS
    for j in range(len(AUG_DIMS)):
        w, b = lin(keys[ki], dims[j], dims[j + 1]); ki += 1
        aug_params += [w, b]

    K = jnp.eye(LATENT_DIM, dtype=jnp.float32)    # random_K=False -> identity Koopman op
    return flow_params, aug_params, K


# ------------------------------ pure-JAX reference ---------------------------------
def ref_forward(x, flow_params, aug_params, K):
    def mlp(v, w1, b1, w2, b2):
        h = v @ w1 + b1
        h = jnp.where(h > 0, h, NEG_SLOPE * h)
        return h @ w2 + b2

    z = x
    for i, p in enumerate(flow_params):
        sw1, sb1, sw2, sb2, mw1, mb1, mw2, mb2 = p
        z1, z2 = z[:, :K_SPLIT], z[:, K_SPLIT:]
        if FLIPS[i]:
            z1, z2 = z2, z1
        sig = mlp(z1, sw1, sb1, sw2, sb2)
        mu = mlp(z1, mw1, mb1, mw2, mb2)
        o1, o2 = z1, z2 * jnp.exp(sig) + mu
        if FLIPS[i]:
            o1, o2 = o2, o1
        z = jnp.concatenate([o1, o2], axis=-1)
    a = x
    for j in range(len(AUG_DIMS)):
        a = a @ aug_params[2 * j] + aug_params[2 * j + 1]
        if j < len(AUG_DIMS) - 1:
            a = jnp.maximum(a, 0.0)
    phi = jnp.concatenate([z, a], axis=-1)
    phi_adv = phi @ K.T
    w = phi_adv[:, :INPUT_DIM]
    for i in reversed(range(N_FLOW)):
        sw1, sb1, sw2, sb2, mw1, mb1, mw2, mb2 = flow_params[i]
        z1, z2 = w[:, :K_SPLIT], w[:, K_SPLIT:]
        if FLIPS[i]:
            z1, z2 = z2, z1
        sig = mlp(z1, sw1, sb1, sw2, sb2)
        mu = mlp(z1, mw1, mb1, mw2, mb2)
        x1, x2 = z1, (z2 - mu) * jnp.exp(-sig)
        if FLIPS[i]:
            x1, x2 = x2, x1
        w = jnp.concatenate([x1, x2], axis=-1)
    return w, phi, phi_adv


if __name__ == "__main__":
    key = jax.random.PRNGKey(0)
    kx, kp, kx2 = jax.random.split(key, 3)
    flow_params, aug_params, K = init_params(kp)

    # ---- small single-tile smoke test ----
    B = 8
    x = jax.random.normal(kx, (B, INPUT_DIM), jnp.float32)
    x_adv, phi, phi_adv = aikae_forward(x, flow_params, aug_params, K)
    jax.block_until_ready((x_adv, phi, phi_adv))

    assert x_adv.shape == (B, INPUT_DIM)
    assert phi.shape == (B, LATENT_DIM)
    assert phi_adv.shape == (B, LATENT_DIM)

    r_x_adv, r_phi, r_phi_adv = ref_forward(x, flow_params, aug_params, K)
    np.testing.assert_allclose(np.asarray(phi), np.asarray(r_phi), rtol=1e-4, atol=1e-4)
    np.testing.assert_allclose(np.asarray(phi_adv), np.asarray(r_phi_adv), rtol=1e-4, atol=1e-4)
    np.testing.assert_allclose(np.asarray(x_adv), np.asarray(r_x_adv), rtol=1e-4, atol=1e-4)
    # with K = identity, decode(one_step_ahead(encode(x))) must recover x
    np.testing.assert_allclose(np.asarray(x_adv), np.asarray(x), rtol=1e-3, atol=1e-3)

    # ---- multi-tile / padded-batch tests (grid > 1, parallel batch axis) ----
    B2 = 300
    x2 = jax.random.normal(kx2, (B2, INPUT_DIM), jnp.float32)
    r_x_adv2, r_phi2, r_phi_adv2 = ref_forward(x2, flow_params, aug_params, K)

    # default heuristic: bt=256 -> 2 parallel grid steps (both TCs on v7x)
    x_adv2, phi2, phi_adv2 = aikae_forward(x2, flow_params, aug_params, K)
    jax.block_until_ready((x_adv2, phi2, phi_adv2))
    np.testing.assert_allclose(np.asarray(phi2), np.asarray(r_phi2), rtol=1e-4, atol=1e-4)
    np.testing.assert_allclose(np.asarray(phi_adv2), np.asarray(r_phi_adv2), rtol=1e-4, atol=1e-4)
    np.testing.assert_allclose(np.asarray(x_adv2), np.asarray(r_x_adv2), rtol=1e-4, atol=1e-4)
    np.testing.assert_allclose(np.asarray(x_adv2), np.asarray(x2), rtol=1e-3, atol=1e-3)

    # explicit small tile: bt=128 -> 3 grid steps with a partially padded last tile
    x_adv3, phi3, phi_adv3 = aikae_forward(x2, flow_params, aug_params, K, batch_tile=128)
    jax.block_until_ready((x_adv3, phi3, phi_adv3))
    np.testing.assert_allclose(np.asarray(phi3), np.asarray(r_phi2), rtol=1e-4, atol=1e-4)
    np.testing.assert_allclose(np.asarray(phi_adv3), np.asarray(r_phi_adv2), rtol=1e-4, atol=1e-4)
    np.testing.assert_allclose(np.asarray(x_adv3), np.asarray(r_x_adv2), rtol=1e-4, atol=1e-4)

    print("KERNEL_OK")
</pallas_src>

<mosaic_0001>
module attributes {stable_mosaic.version = 11 : i64} {
  func.func @aikae_kernel(%arg0: i32, %arg1: memref<8x128xf32, #tpu.memory_space<vmem>>, %arg2: memref<288x128xf32, #tpu.memory_space<vmem>>, %arg3: memref<40x128xf32, #tpu.memory_space<vmem>>) attributes {dimension_semantics = [#tpu.dimension_semantics<parallel>], iteration_bounds = array<i64: 1>, scalar_prefetch = 0 : i64, scratch_operands = 0 : i64, tpu.core_type = #tpu.core_type<tc>, window_params = [{transform_indices = @transform_0, window_bounds = array<i64: 8, 128>}, {pipeline_mode = #tpu.pipeline_mode<synchronous>, transform_indices = @transform_1, window_bounds = array<i64: 288, 128>}, {transform_indices = @transform_2, window_bounds = array<i64: 40, 128>}]} {
    %c0 = arith.constant 0 : index
    %c0_0 = arith.constant 0 : index
    %0 = vector.load %arg1[%c0, %c0_0] : memref<8x128xf32, #tpu.memory_space<vmem>>, vector<8x128xf32>
    %c0_1 = arith.constant 0 : index
    %c0_2 = arith.constant 0 : index
    %1 = vector.load %arg2[%c0_1, %c0_2] : memref<288x128xf32, #tpu.memory_space<vmem>>, vector<96x8xf32>
    %c0_3 = arith.constant 0 : index
    %c64 = arith.constant 64 : index
    %2 = vector.load %arg2[%c0_3, %c64] : memref<288x128xf32, #tpu.memory_space<vmem>>, vector<96x1xf32>
    %cst = arith.constant dense<0.000000e+00> : vector<96x128xf32>
    %3 = tpu.matmul %1, %0, %cst {dimension_numbers = #tpu.dot_dimension_numbers<[1], [0], [0], [1], [0, 0, 1, 1], [], []>} : vector<96x8xf32>, vector<8x128xf32>, vector<96x128xf32> -> vector<96x128xf32>
    %4 = vector.broadcast %2 : vector<96x1xf32> to vector<96x128xf32>
    %5 = arith.addf %3, %4 : vector<96x128xf32>
    %6 = vector.extract_strided_slice %5 {offsets = [0, 0], sizes = [64, 128], strides = [1, 1]} : vector<96x128xf32> to vector<64x128xf32>
    %cst_4 = arith.constant 0.00999999977 : f32
    %7 = vector.broadcast %cst_4 : f32 to vector<64x128xf32>
    %8 = arith.mulf %7, %6 : vector<64x128xf32>
    %9 = arith.maximumf %6, %8 : vector<64x128xf32>
    %c96 = arith.constant 96 : index
    %c0_5 = arith.constant 0 : index
    %10 = vector.load %arg2[%c96, %c0_5] : memref<288x128xf32, #tpu.memory_space<vmem>>, vector<8x64xf32>
    %c96_6 = arith.constant 96 : index
    %c64_7 = arith.constant 64 : index
    %11 = vector.load %arg2[%c96_6, %c64_7] : memref<288x128xf32, #tpu.memory_space<vmem>>, vector<8x1xf32>
    %cst_8 = arith.constant dense<0.000000e+00> : vector<8x128xf32>
    %12 = tpu.matmul %10, %9, %cst_8 {dimension_numbers = #tpu.dot_dimension_numbers<[1], [0], [0], [1], [0, 0, 1, 1], [], []>} : vector<8x64xf32>, vector<64x128xf32>, vector<8x128xf32> -> vector<8x128xf32>
    %13 = vector.broadcast %11 : vector<8x1xf32> to vector<8x128xf32>
    %14 = arith.addf %12, %13 : vector<8x128xf32>
    %15 = vector.extract_strided_slice %14 {offsets = [0, 0], sizes = [4, 128], strides = [1, 1]} : vector<8x128xf32> to vector<4x128xf32>
    %16 = vector.extract_strided_slice %14 {offsets = [4, 0], sizes = [4, 128], strides = [1, 1]} : vector<8x128xf32> to vector<4x128xf32>
    %17 = vector.extract_strided_slice %0 {offsets = [0, 0], sizes = [4, 128], strides = [1, 1]} : vector<8x128xf32> to vector<4x128xf32>
    %18 = vector.extract_strided_slice %0 {offsets = [4, 0], sizes = [4, 128], strides = [1, 1]} : vector<8x128xf32> to vector<4x128xf32>
    %19 = math.exp %15 : vector<4x128xf32>
    %20 = arith.mulf %18, %19 : vector<4x128xf32>
    %21 = arith.addf %20, %16 : vector<4x128xf32>
    %c104 = arith.constant 104 : index
    %c0_9 = arith.constant 0 : index
    %22 = vector.load %arg2[%c104, %c0_9] : memref<288x128xf32, #tpu.memory_space<vmem>>, vector<64x4xf32>
    %c104_10 = arith.constant 104 : index
    %c64_11 = arith.constant 64 : index
    %23 = vector.load %arg2[%c104_10, %c64_11] : memref<288x128xf32, #tpu.memory_space<vmem>>, vector<64x1xf32>
    %cst_12 = arith.constant dense<0.000000e+00> : vector<64x128xf32>
    %24 = tpu.matmul %22, %21, %cst_12 {dimension_numbers = #tpu.dot_dimension_numbers<[1], [0], [0], [1], [0, 0, 1, 1], [], []>} : vector<64x4xf32>, vector<4x128xf32>, vector<64x128xf32> -> vector<64x128xf32>
    %25 = vector.broadcast %23 : vector<64x1xf32> to vector<64x128xf32>
    %26 = arith.addf %24, %25 : vector<64x128xf32>
    %cst_13 = arith.constant 0.00999999977 : f32
    %27 = vector.broadcast %cst_13 : f32 to vector<64x128xf32>
    %28 = arith.mulf %27, %26 : vector<64x128xf32>
    %29 = arith.maximumf %26, %28 : vector<64x128xf32>
    %c168 = arith.constant 168 : index
    %c0_14 = arith.constant 0 : index
    %30 = vector.load %arg2[%c168, %c0_14] : memref<288x128xf32, #tpu.memory_space<vmem>>, vector<8x64xf32>
    %c168_15 = arith.constant 168 : index
    %c64_16 = arith.constant 64 : index
    %31 = vector.load %arg2[%c168_15, %c64_16] : memref<288x128xf32, #tpu.memory_space<vmem>>, vector<8x1xf32>
    %cst_17 = arith.constant dense<0.000000e+00> : vector<8x128xf32>
    %32 = tpu.matmul %30, %29, %cst_17 {dimension_numbers = #tpu.dot_dimension_numbers<[1], [0], [0], [1], [0, 0, 1, 1], [], []>} : vector<8x64xf32>, vector<64x128xf32>, vector<8x128xf32> -> vector<8x128xf32>
    %33 = vector.broadcast %31 : vector<8x1xf32> to vector<8x128xf32>
    %34 = arith.addf %32, %33 : vector<8x128xf32>
    %35 = vector.extract_strided_slice %34 {offsets = [0, 0], sizes = [4, 128], strides = [1, 1]} : vector<8x128xf32> to vector<4x128xf32>
    %36 = vector.extract_strided_slice %34 {offsets = [4, 0], sizes = [4, 128], strides = [1, 1]} : vector<8x128xf32> to vector<4x128xf32>
    %37 = math.exp %35 : vector<4x128xf32>
    %38 = arith.mulf %17, %37 : vector<4x128xf32>
    %39 = arith.addf %38, %36 : vector<4x128xf32>
    %c176 = arith.constant 176 : index
    %c0_18 = arith.constant 0 : index
    %40 = vector.load %arg2[%c176, %c0_18] : memref<288x128xf32, #tpu.memory_space<vmem>>, vector<64x4xf32>
    %c176_19 = arith.constant 176 : index
    %c64_20 = arith.constant 64 : index
    %41 = vector.load %arg2[%c176_19, %c64_20] : memref<288x128xf32, #tpu.memory_space<vmem>>, vector<64x1xf32>
    %cst_21 = arith.constant dense<0.000000e+00> : vector<64x128xf32>
    %42 = tpu.matmul %40, %39, %cst_21 {dimension_numbers = #tpu.dot_dimension_numbers<[1], [0], [0], [1], [0, 0, 1, 1], [], []>} : vector<64x4xf32>, vector<4x128xf32>, vector<64x128xf32> -> vector<64x128xf32>
    %43 = vector.broadcast %41 : vector<64x1xf32> to vector<64x128xf32>
    %44 = arith.addf %42, %43 : vector<64x128xf32>
    %cst_22 = arith.constant 0.00999999977 : f32
    %45 = vector.broadcast %cst_22 : f32 to vector<64x128xf32>
    %46 = arith.mulf %45, %44 : vector<64x128xf32>
    %47 = arith.maximumf %44, %46 : vector<64x128xf32>
    %c240 = arith.constant 240 : index
    %c0_23 = arith.constant 0 : index
    %48 = vector.load %arg2[%c240, %c0_23] : memref<288x128xf32, #tpu.memory_space<vmem>>, vector<8x64xf32>
    %c240_24 = arith.constant 240 : index
    %c64_25 = arith.constant 64 : index
    %49 = vector.load %arg2[%c240_24, %c64_25] : memref<288x128xf32, #tpu.memory_space<vmem>>, vector<8x1xf32>
    %cst_26 = arith.constant dense<0.000000e+00> : vector<8x128xf32>
    %50 = tpu.matmul %48, %47, %cst_26 {dimension_numbers = #tpu.dot_dimension_numbers<[1], [0], [0], [1], [0, 0, 1, 1], [], []>} : vector<8x64xf32>, vector<64x128xf32>, vector<8x128xf32> -> vector<8x128xf32>
    %51 = vector.broadcast %49 : vector<8x1xf32> to vector<8x128xf32>
    %52 = arith.addf %50, %51 : vector<8x128xf32>
    %53 = vector.extract_strided_slice %52 {offsets = [0, 0], sizes = [4, 128], strides = [1, 1]} : vector<8x128xf32> to vector<4x128xf32>
    %54 = vector.extract_strided_slice %52 {offsets = [4, 0], sizes = [4, 128], strides = [1, 1]} : vector<8x128xf32> to vector<4x128xf32>
    %55 = math.exp %53 : vector<4x128xf32>
    %56 = arith.mulf %21, %55 : vector<4x128xf32>
    %57 = arith.addf %56, %54 : vector<4x128xf32>
    %58 = vector.extract_strided_slice %5 {offsets = [64, 0], sizes = [32, 128], strides = [1, 1]} : vector<96x128xf32> to vector<32x128xf32>
    %cst_27 = arith.constant 0.000000e+00 : f32
    %59 = vector.broadcast %cst_27 : f32 to vector<32x128xf32>
    %60 = arith.maximumf %58, %59 : vector<32x128xf32>
    %c248 = arith.constant 248 : index
    %c0_28 = arith.constant 0 : index
    %61 = vector.load %arg2[%c248, %c0_28] : memref<288x128xf32, #tpu.memory_space<vmem>>, vector<16x32xf32>
    %c248_29 = arith.constant 248 : index
    %c64_30 = arith.constant 64 : index
    %62 = vector.load %arg2[%c248_29, %c64_30] : memref<288x128xf32, #tpu.memory_space<vmem>>, vector<16x1xf32>
    %cst_31 = arith.constant dense<0.000000e+00> : vector<16x128xf32>
    %63 = tpu.matmul %61, %60, %cst_31 {dimension_numbers = #tpu.dot_dimension_numbers<[1], [0], [0], [1], [0, 0, 1, 1], [], []>} : vector<16x32xf32>, vector<32x128xf32>, vector<16x128xf32> -> vector<16x128xf32>
    %64 = vector.broadcast %62 : vector<16x1xf32> to vector<16x128xf32>
    %65 = arith.addf %63, %64 : vector<16x128xf32>
    %cst_32 = arith.constant 0.000000e+00 : f32
    %66 = vector.broadcast %cst_32 : f32 to vector<16x128xf32>
    %67 = arith.maximumf %65, %66 : vector<16x128xf32>
    %c264 = arith.constant 264 : index
    %c0_33 = arith.constant 0 : index
    %68 = vector.load %arg2[%c264, %c0_33] : memref<288x128xf32, #tpu.memory_space<vmem>>, vector<8x16xf32>
    %c264_34 = arith.constant 264 : index
    %c64_35 = arith.constant 64 : index
    %69 = vector.load %arg2[%c264_34, %c64_35] : memref<288x128xf32, #tpu.memory_space<vmem>>, vector<8x1xf32>
    %cst_36 = arith.constant dense<0.000000e+00> : vector<8x128xf32>
    %70 = tpu.matmul %68, %67, %cst_36 {dimension_numbers = #tpu.dot_dimension_numbers<[1], [0], [0], [1], [0, 0, 1, 1], [], []>} : vector<8x16xf32>, vector<16x128xf32>, vector<8x128xf32> -> vector<8x128xf32>
    %71 = vector.broadcast %69 : vector<8x1xf32> to vector<8x128xf32>
    %72 = arith.addf %70, %71 : vector<8x128xf32>
    %73 = tpu.concatenate %39, %57, %72 in 0 : vector<4x128xf32>, vector<4x128xf32>, vector<8x128xf32> -> vector<16x128xf32>
    %c272 = arith.constant 272 : index
    %c0_37 = arith.constant 0 : index
    %74 = vector.load %arg2[%c272, %c0_37] : memref<288x128xf32, #tpu.memory_space<vmem>>, vector<16x16xf32>
    %cst_38 = arith.constant dense<0.000000e+00> : vector<16x128xf32>
    %75 = tpu.matmul %74, %73, %cst_38 {dimension_numbers = #tpu.dot_dimension_numbers<[1], [0], [0], [1], [0, 0, 1, 1], [], []>} : vector<16x16xf32>, vector<16x128xf32>, vector<16x128xf32> -> vector<16x128xf32>
    %76 = vector.extract_strided_slice %75 {offsets = [0, 0], sizes = [4, 128], strides = [1, 1]} : vector<16x128xf32> to vector<4x128xf32>
    %77 = vector.extract_strided_slice %75 {offsets = [4, 0], sizes = [4, 128], strides = [1, 1]} : vector<16x128xf32> to vector<4x128xf32>
    %c176_39 = arith.constant 176 : index
    %c0_40 = arith.constant 0 : index
    %78 = vector.load %arg2[%c176_39, %c0_40] : memref<288x128xf32, #tpu.memory_space<vmem>>, vector<64x4xf32>
    %c176_41 = arith.constant 176 : index
    %c64_42 = arith.constant 64 : index
    %79 = vector.load %arg2[%c176_41, %c64_42] : memref<288x128xf32, #tpu.memory_space<vmem>>, vector<64x1xf32>
    %cst_43 = arith.constant dense<0.000000e+00> : vector<64x128xf32>
    %80 = tpu.matmul %78, %76, %cst_43 {dimension_numbers = #tpu.dot_dimension_numbers<[1], [0], [0], [1], [0, 0, 1, 1], [], []>} : vector<64x4xf32>, vector<4x128xf32>, vector<64x128xf32> -> vector<64x128xf32>
    %81 = vector.broadcast %79 : vector<64x1xf32> to vector<64x128xf32>
    %82 = arith.addf %80, %81 : vector<64x128xf32>
    %cst_44 = arith.constant 0.00999999977 : f32
    %83 = vector.broadcast %cst_44 : f32 to vector<64x128xf32>
    %84 = arith.mulf %83, %82 : vector<64x128xf32>
    %85 = arith.maximumf %82, %84 : vector<64x128xf32>
    %c240_45 = arith.constant 240 : index
    %c0_46 = arith.constant 0 : index
    %86 = vector.load %arg2[%c240_45, %c0_46] : memref<288x128xf32, #tpu.memory_space<vmem>>, vector<8x64xf32>
    %c240_47 = arith.constant 240 : index
    %c64_48 = arith.constant 64 : index
    %87 = vector.load %arg2[%c240_47, %c64_48] : memref<288x128xf32, #tpu.memory_space<vmem>>, vector<8x1xf32>
    %cst_49 = arith.constant dense<0.000000e+00> : vector<8x128xf32>
    %88 = tpu.matmul %86, %85, %cst_49 {dimension_numbers = #tpu.dot_dimension_numbers<[1], [0], [0], [1], [0, 0, 1, 1], [], []>} : vector<8x64xf32>, vector<64x128xf32>, vector<8x128xf32> -> vector<8x128xf32>
    %89 = vector.broadcast %87 : vector<8x1xf32> to vector<8x128xf32>
    %90 = arith.addf %88, %89 : vector<8x128xf32>
    %91 = vector.extract_strided_slice %90 {offsets = [0, 0], sizes = [4, 128], strides = [1, 1]} : vector<8x128xf32> to vector<4x128xf32>
    %92 = vector.extract_strided_slice %90 {offsets = [4, 0], sizes = [4, 128], strides = [1, 1]} : vector<8x128xf32> to vector<4x128xf32>
    %93 = arith.subf %77, %92 : vector<4x128xf32>
    %cst_50 = arith.constant 0.000000e+00 : f32
    %94 = vector.broadcast %cst_50 : f32 to vector<4x128xf32>
    %95 = arith.subf %94, %91 : vector<4x128xf32>
    %96 = math.exp %95 : vector<4x128xf32>
    %97 = arith.mulf %93, %96 : vector<4x128xf32>
    %c104_51 = arith.constant 104 : index
    %c0_52 = arith.constant 0 : index
    %98 = vector.load %arg2[%c104_51, %c0_52] : memref<288x128xf32, #tpu.memory_space<vmem>>, vector<64x4xf32>
    %c104_53 = arith.constant 104 : index
    %c64_54 = arith.constant 64 : index
    %99 = vector.load %arg2[%c104_53, %c64_54] : memref<288x128xf32, #tpu.memory_space<vmem>>, vector<64x1xf32>
    %cst_55 = arith.constant dense<0.000000e+00> : vector<64x128xf32>
    %100 = tpu.matmul %98, %97, %cst_55 {dimension_numbers = #tpu.dot_dimension_numbers<[1], [0], [0], [1], [0, 0, 1, 1], [], []>} : vector<64x4xf32>, vector<4x128xf32>, vector<64x128xf32> -> vector<64x128xf32>
    %101 = vector.broadcast %99 : vector<64x1xf32> to vector<64x128xf32>
    %102 = arith.addf %100, %101 : vector<64x128xf32>
    %cst_56 = arith.constant 0.00999999977 : f32
    %103 = vector.broadcast %cst_56 : f32 to vector<64x128xf32>
    %104 = arith.mulf %103, %102 : vector<64x128xf32>
    %105 = arith.maximumf %102, %104 : vector<64x128xf32>
    %c168_57 = arith.constant 168 : index
    %c0_58 = arith.constant 0 : index
    %106 = vector.load %arg2[%c168_57, %c0_58] : memref<288x128xf32, #tpu.memory_space<vmem>>, vector<8x64xf32>
    %c168_59 = arith.constant 168 : index
    %c64_60 = arith.constant 64 : index
    %107 = vector.load %arg2[%c168_59, %c64_60] : memref<288x128xf32, #tpu.memory_space<vmem>>, vector<8x1xf32>
    %cst_61 = arith.constant dense<0.000000e+00> : vector<8x128xf32>
    %108 = tpu.matmul %106, %105, %cst_61 {dimension_numbers = #tpu.dot_dimension_numbers<[1], [0], [0], [1], [0, 0, 1, 1], [], []>} : vector<8x64xf32>, vector<64x128xf32>, vector<8x128xf32> -> vector<8x128xf32>
    %109 = vector.broadcast %107 : vector<8x1xf32> to vector<8x128xf32>
    %110 = arith.addf %108, %109 : vector<8x128xf32>
    %111 = vector.extract_strided_slice %110 {offsets = [0, 0], sizes = [4, 128], strides = [1, 1]} : vector<8x128xf32> to vector<4x128xf32>
    %112 = vector.extract_strided_slice %110 {offsets = [4, 0], sizes = [4, 128], strides = [1, 1]} : vector<8x128xf32> to vector<4x128xf32>
    %113 = arith.subf %76, %112 : vector<4x128xf32>
    %cst_62 = arith.constant 0.000000e+00 : f32
    %114 = vector.broadcast %cst_62 : f32 to vector<4x128xf32>
    %115 = arith.subf %114, %111 : vector<4x128xf32>
    %116 = math.exp %115 : vector<4x128xf32>
    %117 = arith.mulf %113, %116 : vector<4x128xf32>
    %c0_63 = arith.constant 0 : index
    %c0_64 = arith.constant 0 : index
    %118 = vector.load %arg2[%c0_63, %c0_64] : memref<288x128xf32, #tpu.memory_space<vmem>>, vector<64x4xf32>
    %c0_65 = arith.constant 0 : index
    %c64_66 = arith.constant 64 : index
    %119 = vector.load %arg2[%c0_65, %c64_66] : memref<288x128xf32, #tpu.memory_space<vmem>>, vector<64x1xf32>
    %cst_67 = arith.constant dense<0.000000e+00> : vector<64x128xf32>
    %120 = tpu.matmul %118, %117, %cst_67 {dimension_numbers = #tpu.dot_dimension_numbers<[1], [0], [0], [1], [0, 0, 1, 1], [], []>} : vector<64x4xf32>, vector<4x128xf32>, vector<64x128xf32> -> vector<64x128xf32>
    %121 = vector.broadcast %119 : vector<64x1xf32> to vector<64x128xf32>
    %122 = arith.addf %120, %121 : vector<64x128xf32>
    %cst_68 = arith.constant 0.00999999977 : f32
    %123 = vector.broadcast %cst_68 : f32 to vector<64x128xf32>
    %124 = arith.mulf %123, %122 : vector<64x128xf32>
    %125 = arith.maximumf %122, %124 : vector<64x128xf32>
    %c96_69 = arith.constant 96 : index
    %c0_70 = arith.constant 0 : index
    %126 = vector.load %arg2[%c96_69, %c0_70] : memref<288x128xf32, #tpu.memory_space<vmem>>, vector<8x64xf32>
    %c96_71 = arith.constant 96 : index
    %c64_72 = arith.constant 64 : index
    %127 = vector.load %arg2[%c96_71, %c64_72] : memref<288x128xf32, #tpu.memory_space<vmem>>, vector<8x1xf32>
    %cst_73 = arith.constant dense<0.000000e+00> : vector<8x128xf32>
    %128 = tpu.matmul %126, %125, %cst_73 {dimension_numbers = #tpu.dot_dimension_numbers<[1], [0], [0], [1], [0, 0, 1, 1], [], []>} : vector<8x64xf32>, vector<64x128xf32>, vector<8x128xf32> -> vector<8x128xf32>
    %129 = vector.broadcast %127 : vector<8x1xf32> to vector<8x128xf32>
    %130 = arith.addf %128, %129 : vector<8x128xf32>
    %131 = vector.extract_strided_slice %130 {offsets = [0, 0], sizes = [4, 128], strides = [1, 1]} : vector<8x128xf32> to vector<4x128xf32>
    %132 = vector.extract_strided_slice %130 {offsets = [4, 0], sizes = [4, 128], strides = [1, 1]} : vector<8x128xf32> to vector<4x128xf32>
    %133 = arith.subf %97, %132 : vector<4x128xf32>
    %cst_74 = arith.constant 0.000000e+00 : f32
    %134 = vector.broadcast %cst_74 : f32 to vector<4x128xf32>
    %135 = arith.subf %134, %131 : vector<4x128xf32>
    %136 = math.exp %135 : vector<4x128xf32>
    %137 = arith.mulf %133, %136 : vector<4x128xf32>
    %138 = tpu.concatenate %117, %137, %73, %75 in 0 : vector<4x128xf32>, vector<4x128xf32>, vector<16x128xf32>, vector<16x128xf32> -> vector<40x128xf32>
    %c0_75 = arith.constant 0 : index
    %c0_76 = arith.constant 0 : index
    %139 = vector.load %arg3[%c0_75, %c0_76] : memref<40x128xf32, #tpu.memory_space<vmem>>, vector<40x128xf32>
    tpu.vector_store %arg3[%c0_75, %c0_76], %138 {strides = array<i32>} : memref<40x128xf32, #tpu.memory_space<vmem>>, vector<40x128xf32>,
    return
  }
  func.func @transform_0(%arg0: i32) -> (i32, i32) {
    %c0_i32 = arith.constant 0 : i32
    %c0_i32_0 = arith.constant 0 : i32
    return %c0_i32, %arg0 : i32, i32
  }
  func.func @transform_1(%arg0: i32) -> (i32, i32) {
    %c0_i32 = arith.constant 0 : i32
    %c0_i32_0 = arith.constant 0 : i32
    %c0_i32_1 = arith.constant 0 : i32
    return %c0_i32, %c0_i32_0 : i32, i32
  }
  func.func @transform_2(%arg0: i32) -> (i32, i32) {
    %c0_i32 = arith.constant 0 : i32
    %c0_i32_0 = arith.constant 0 : i32
    return %c0_i32, %arg0 : i32, i32
  }
}

</mosaic_0001>

<bundles_post_ra>
// kernel: aikae_forward.1
= control target key start
LH: loop header
LB: loop body
LE: loop exit
PB: predicated region body
PF: predicated region fallthrough
CT: control target
= control target key end

     0   :  { %v1067_v0 = vmov 64   ;;  %vm84_vm0 = vcmask 64512   ;;  %vm184_vm1 = vcmask 523264   ;;  %vm281_vm2 = vcmask 1043456   ;;  %s1547_s1 = inlined_call_operand.vmem [shape: f32[288,128], index: 1, kind: input, shape index: {}]   ;;  %s1548_s0 = inlined_call_operand.vmem [shape: f32[8,128], index: 0, kind: input, shape index: {}]   ;;  %s1549_s2 = inlined_call_operand.vmem [shape: f32[40,128], index: 2, kind: output, shape index: {}]  }
   0x1   :  { %1054 = vset.pattern.permute.xlu2 %v1067_v0  ;;  %1053 = vset.pattern.permute.xlu1 %v1067_v0  ;;  %v1086_v1 = vld [vmem:[%s1547_s1 + $0x38] sm:$0xff]  ;;  %v1091_v2 = vld [vmem:[%s1547_s1 + $0x28] sm:$0xff]  ;;  %v1102_v4 = vld [vmem:[%s1548_s0] sm:$0xff]  ;;  %vm264_vm3 = vcmask 31744   ;;  %vm551_vm4 = vcmask 261120   ;;  %vm587_vm5 = vcmask 130048  }
   0x2   :  { %1562 = vst [vmem:[#allocation2_spill] sm:$0xff] %v1086_v1  ;;  %v1096_v3 = vld [vmem:[%s1547_s1 + $0x18] sm:$0xff]  ;;  %1052 = vset.pattern.permute.xlu0 %v1067_v0  ;;  %51 = vperm.xlu1 %1053, %v1091_v2   ;;  %v1107_v5 = vld [vmem:[%s1547_s1] sm:$0xff]  ;;  %v21_v6 = vld [vmem:[%s1547_s1 + $0x48] sm:$0xff] }
   0x3   :  { %1563 = vst [vmem:[#allocation3_spill] sm:$0xff] %v1091_v2  ;;  %61 = vperm.xlu0 %1052, %v1086_v1   ;;  %41 = vperm.xlu2 %1054, %v1096_v3   ;;  %v1121_v7 = vld [vmem:[%s1547_s1 + $0x20] sm:$0xff]  ;;  %v1127_v8 = vld [vmem:[%s1547_s1 + $0x30] sm:$0xff]  ;;  %v1138_v10 = vld [vmem:[%s1547_s1 + $0x8] sm:$0xff] }
   0x4   :  { %1564 = vst [vmem:[#allocation4_spill] sm:$0xff] %v1096_v3  ;;  %124 = vmatpush.msra.mxu0 %v1102_v4  ;;  %1049 = vmatpush.msra.mxu3 %v1102_v4  ;;  %v1132_v9 = vld [vmem:[%s1547_s1 + $0x10] sm:$0xff]  ;;  %v1151_v12 = vld [vmem:[%s1547_s1 + $0x60] sm:$0xff]  ;;  %v23_v13 = vld [vmem:[%s1547_s1 + $0x58] sm:$0xff] }
   0x5   :  { %1565 = vst [vmem:[#allocation5_spill] sm:$0xff] %v1107_v5  ;;  %981 = vmatmul.msk.f32.vlgmr.msra.gmra.mxu0 %vm84_vm0, %v1107_v5  ;;  %990 = vmatmul.msk.f32.vlgmr.msra.gmra.mxu3 %vm84_vm0, %v21_v6  ;;  %v22_v11 = vld [vmem:[%s1547_s1 + $0x50] sm:$0xff]  ;;  %v1164_v14 = vld [vmem:[%s1547_s1 + $0x98] sm:$0xff]  ;;  %v1175_v16 = vld [vmem:[%s1547_s1 + $0xa0] sm:$0xff] }
   0x6   :  { %1566 = vst [vmem:[#allocation6_spill] sm:$0xff] %v1121_v7  ;;  %v1170_v15 = vld [vmem:[%s1547_s1 + $0x90] sm:$0xff]  ;;  %v1185_v17 = vld [vmem:[%s1547_s1 + $0x80] sm:$0xff]  ;;  %v1190_v18 = vld [vmem:[%s1547_s1 + $0x78] sm:$0xff] }
   0x7   :  { %1567 = vst [vmem:[#allocation7_spill] sm:$0xff] %v1127_v8  ;;  %v1195_v19 = vld [vmem:[%s1547_s1 + $0x88] sm:$0xff]  ;;  %v1215_v22 = vld [vmem:[%s1547_s1 + $0x70] sm:$0xff]  ;;  %v1225_v23 = vld [vmem:[%s1547_s1 + $0xe0] sm:$0xff] }
   0x8   :  { %1568 = vst [vmem:[#allocation8_spill] sm:$0xff] %v1132_v9  ;;  %v1205_v20 = vld [vmem:[%s1547_s1 + $0x68] sm:$0xff]  ;;  %v1230_v24 = vld [vmem:[%s1547_s1 + $0xd8] sm:$0xff]  ;;  %v1250_v27 = vld [vmem:[%s1547_s1 + $0xc0] sm:$0xff] }
   0x9   :  { %1569 = vst [vmem:[#allocation9_spill] sm:$0xff] %v1138_v10  ;;  %v1210_v21 = vld [vmem:[%s1547_s1 + $0xa8] sm:$0xff]  ;;  %v1255_v28 = vld [vmem:[%s1547_s1 + $0xd0] sm:$0xff]  ;;  %v1270_v30 = vld [vmem:[%s1547_s1 + $0xb8] sm:$0xff] }
   0xa   :  { %46 = vperm.xlu1 %1053, %v1121_v7   ;;  %1570 = vst [vmem:[#allocation10_spill] sm:$0xff] %v1151_v12  ;;  %v1235_v25 = vld [vmem:[%s1547_s1 + $0xe8] sm:$0xff]  ;;  %v1265_v29 = vld [vmem:[%s1547_s1 + $0xb0] sm:$0xff]  ;;  %v20_v31 = vld [vmem:[%s1547_s1 + $0x40] sm:$0xff] }
   0xb   :  { %56 = vperm.xlu0 %1052, %v1127_v8   ;;  %36 = vperm.xlu2 %1054, %v1132_v9   ;;  %1571 = vst [vmem:[#allocation11_spill] sm:$0xff] %v1210_v21  ;;  %v1245_v26 = vld [vmem:[%s1547_s1 + $0xc8] sm:$0xff]  ;;  %v1281_v32 = vld [vmem:[%s1547_s1 + $0xf8] sm:$0xff]  ;;  %v1286_v33 = vld [vmem:[%s1547_s1 + $0xf0] sm:$0xff] }
   0xc   :  { %v1291_v34 = vld [vmem:[%s1547_s1 + $0x100] sm:$0xff]  ;;  %v1299_v35 = vld [vmem:[%s1547_s1 + $0x108] sm:$0xff] }
   0xd   :  { %982 = vmatmul.msk.f32.gmra.mxu0 %vm84_vm0, %v1138_v10  ;;  %991 = vmatmul.msk.f32.gmra.mxu3 %vm84_vm0, %v22_v11 }
  0x12   :  { %26 = vperm.xlu1 %1053, %v1107_v5  }
  0x13   :  { %181 = vperm.xlu2 %1054, %v1151_v12   ;;  %31 = vperm.xlu0 %1052, %v1138_v10  }
  0x15   :  { %983 = vmatmul.msk.f32.gmra.mxu0 %vm84_vm0, %v1132_v9  ;;  %992 = vmatmul.msk.f32.gmra.mxu3 %vm84_vm0, %v23_v13 }
  0x1a   :  { %254 = vperm.xlu1 %1053, %v1164_v14  }
  0x1b   :  { %249 = vperm.xlu2 %1054, %v1170_v15   ;;  %259 = vperm.xlu0 %1052, %v1175_v16  }
  0x1d   :  { %984 = vmatmul.msk.f32.gmra.mxu0 %vm84_vm0, %v1096_v3 }
  0x22   :  { %239 = vperm.xlu1 %1053, %v1185_v17  }
  0x23   :  { %234 = vperm.xlu2 %1054, %v1190_v18   ;;  %244 = vperm.xlu0 %1052, %v1195_v19  }
  0x25   :  { %985 = vmatmul.msk.f32.gmra.mxu0 %vm84_vm0, %v1121_v7 }
  0x2a   :  { %224 = vperm.xlu1 %1053, %v1205_v20  }
  0x2b   :  { %344 = vperm.xlu2 %1054, %v1210_v21   ;;  %229 = vperm.xlu0 %1052, %v1215_v22  }
  0x2d   :  { %986 = vmatmul.msk.f32.gmra.mxu0 %vm84_vm0, %v1091_v2 }
  0x32   :  { %416 = vperm.xlu1 %1053, %v1225_v23  }
  0x33   :  { %411 = vperm.xlu2 %1054, %v1230_v24   ;;  %421 = vperm.xlu0 %1052, %v1235_v25  }
  0x35   :  { %987 = vmatmul.msk.f32.gmra.mxu0 %vm84_vm0, %v1127_v8 }
  0x3a   :  { %401 = vperm.xlu1 %1053, %v1245_v26  }
  0x3b   :  { %396 = vperm.xlu2 %1054, %v1250_v27   ;;  %406 = vperm.xlu0 %1052, %v1255_v28  }
  0x3d   :  { %988 = vmatmul.msk.f32.gmra.mxu0 %vm84_vm0, %v1086_v1 }
  0x42   :  { %386 = vperm.xlu1 %1053, %v1265_v29  }
  0x43   :  { %81 = vperm.xlu2 %1054, %v23_v13   ;;  %391 = vperm.xlu0 %1052, %v1270_v30  }
  0x45   :  { %989 = vmatmul.msk.f32.gmra.mxu0 %vm84_vm0, %v20_v31 }
  0x4a   :  { %71 = vperm.xlu1 %1053, %v21_v6  }
  0x4b   :  { %66 = vperm.xlu2 %1054, %v20_v31   ;;  %76 = vperm.xlu0 %1052, %v22_v11  }
  0x52   :  { %543 = vperm.xlu1 %1053, %v1281_v32  }
  0x53   :  { %503 = vperm.xlu2 %1054, %v1286_v33   ;;  %548 = vperm.xlu0 %1052, %v1291_v34  }
  0x5a   :  { %864 = vperm.xlu1 %1053, %v1086_v1  }
  0x5b   :  { %859 = vperm.xlu2 %1054, %v1127_v8   ;;  %584 = vperm.xlu0 %1052, %v1299_v35  }
  0x5d   :  { %v42_v45 = vpop.permute.xlu2 %41 }
  0x62   :  { %849 = vperm.xlu1 %1053, %v1121_v7  }
  0x63   :  { %844 = vperm.xlu2 %1054, %v1096_v3   ;;  %854 = vperm.xlu0 %1052, %v1091_v2  }
  0x65   :  { %v37_v58 = vpop.permute.xlu2 %36 }
  0x6a   :  { %834 = vperm.xlu1 %1053, %v1138_v10  }
  0x6b   :  { %829 = vperm.xlu2 %1054, %v1107_v5   ;;  %839 = vperm.xlu0 %1052, %v1132_v9  }
  0x74   :  { %v52_v43 = vpop.permute.xlu1 %51 }
  0x75   :  { %v62_v42 = vpop.permute.xlu0 %61 }
  0x7c   :  { %v47_v47 = vpop.permute.xlu1 %46 }
  0x7d   :  { %v57_v46 = vpop.permute.xlu0 %56 }
  0x82   :  { %v126_v36 = vpop.f32.mrf.mxu0 }
  0x84   :  { %v27_v63 = vpop.permute.xlu1 %26 }
  0x85   :  { %v32_v62 = vpop.permute.xlu0 %31  ;;  %v127_v13 = vadd.f32 %v126_v36, %v27_v63 }
  0x8a   :  { %v129_v37 = vpop.f32.mrf.mxu0 }
  0x8b   :  { %v130_v0 = vadd.f32 %v129_v37, %v32_v62  ;;  %v1312_v37 = vpop.permute.xlu2 %181 }
  0x8c   :  { %1572 = vst [vmem:[#allocation12_spill] sm:$0xff] %v1312_v37 }
  0x92   :  { %v132_v38 = vpop.f32.mrf.mxu0 }
  0x93   :  { %v133_v59 = vadd.f32 %v132_v38, %v37_v58  ;;  %v1336_v58 = vpop.permute.xlu0 %259 }
  0x95   :  { %v164_v31 = vmul.f32 0.01, %v133_v59 }
  0x9a   :  { %v135_v39 = vpop.f32.mrf.mxu0 }
  0x9b   :  { %v136_v55 = vadd.f32 %v135_v39, %v42_v45  ;;  %v1342_v62 = vpop.permute.xlu0 %244 }
  0x9d   :  { %v165_v6 = vmul.f32 0.01, %v136_v55 }
  0x9f   :  { %v173_v39 = vmax.f32 %v136_v55, %v165_v6 }
  0xa2   :  { %v138_v40 = vpop.f32.mrf.mxu0 }
  0xa3   :  { %v139_v52 = vadd.f32 %v138_v40, %v47_v47 }
  0xa5   :  { %v166_v60 = vmul.f32 0.01, %v139_v52 }
  0xa7   :  { %v174_v40 = vmax.f32 %v139_v52, %v166_v60 }
  0xaa   :  { %v141_v41 = vpop.f32.mrf.mxu0 }
  0xab   :  { %v142_v50 = vadd.f32 %v141_v41, %v52_v43  ;;  %v163_v41 = vmul.f32 0.01, %v130_v0  ;;  %v172_v43 = vmax.f32 %v133_v59, %v164_v31  ;;  %v1338_v59 = vpop.permute.xlu1 %254 }
  0xad   :  { %v167_v56 = vmul.f32 0.01, %v142_v50  ;;  %v171_v38 = vmax.f32 %v130_v0, %v163_v41 }
  0xaf   :  { %v175_v11 = vmax.f32 %v142_v50, %v167_v56 }
  0xb2   :  { %v144_v44 = vpop.f32.mrf.mxu0 }
  0xb3   :  { %v145_v48 = vadd.f32 %v144_v44, %v57_v46  ;;  %v1345_v0 = vpop.permute.xlu1 %239 }
  0xb5   :  { %v168_v53 = vmul.f32 0.01, %v145_v48 }
  0xb7   :  { %v176_v61 = vmax.f32 %v145_v48, %v168_v53 }
  0xba   :  { %v147_v49 = vpop.f32.mrf.mxu0 }
  0xbb   :  { %v148_v51 = vadd.f32 %v147_v49, %v62_v42  ;;  %v162_v42 = vmul.f32 0.01, %v127_v13 }
  0xbd   :  { %v169_v54 = vmul.f32 0.01, %v148_v51  ;;  %v170_v44 = vmax.f32 %v127_v13, %v162_v42 }
  0xbf   :  { %v177_v57 = vmax.f32 %v148_v51, %v169_v54 }
  0xc1   :  { %195 = vmatpush.msra.mxu1 %v177_v57 }
  0xc3   :  { %196 = vmatpush.msra.mxu1 %v176_v61  ;;  %v1340_v61 = vpop.permute.xlu2 %249 }
  0xc5   :  { %197 = vmatpush.msra.mxu1 %v175_v11 }
  0xc7   :  { %198 = vmatpush.msra.mxu1 %v174_v40 }
  0xc9   :  { %199 = vmatpush.msra.mxu1 %v173_v39 }
  0xcb   :  { %200 = vmatpush.msra.mxu1 %v172_v43 }
  0xcd   :  { %201 = vmatpush.msra.mxu1 %v171_v38  ;;  %v1351_v38 = vpop.permute.xlu2 %234 }
  0xcf   :  { %202 = vmatpush.msra.mxu1 %v170_v44 }
  0xd0   :  { %993 = vmatmul.msk.f32.vlgmr.msra.gmra.mxu1 %vm184_vm1, %v1151_v12 }
 0x14d   :  { %v204_v36 = vpop.f32.mrf.mxu1 }
 0x14e   :  { %v205_v45 = vadd.f32 %v204_v36, %v1312_v37 }
 0x150   :  { %v207_v46 = vmul.f32 1.442695, %v205_v45 }
 0x152   :  { %1055 = vpow2.f32 %v207_v46  ;;  %v1354_v46 = vpop.permute.xlu0 %229 }
 0x158   :  { %v1056_v47 = vpop.eup %1055 }
 0x159   :  { %v210_v48 = vrot.slane %v1056_v47, 4 }
 0x15b   :  { %v212_v49 = vmul.f32 %v210_v48, %v1102_v4 }
 0x15d   :  { %v1316_v50 = vadd.f32 %v212_v49, %v205_v45 }
 0x15f   :  { %v263_v51 = vrot.slane %v1316_v50, 4 }
 0x161   :  { %994 = vmatpush.msk.msra.mxu2 %vm281_vm2, %v263_v51  ;;  %v1357_v51 = vpop.permute.xlu1 %224 }
 0x162   :  { %995 = vmatmul.msk.f32.vlgmr.msra.gmra.mxu2 %vm264_vm3, %v1205_v20 }
 0x16a   :  { %996 = vmatmul.msk.f32.gmra.mxu2 %vm264_vm3, %v1215_v22 }
 0x172   :  { %997 = vmatmul.msk.f32.gmra.mxu2 %vm264_vm3, %v1190_v18 }
 0x17a   :  { %998 = vmatmul.msk.f32.gmra.mxu2 %vm264_vm3, %v1185_v17 }
 0x182   :  { %999 = vmatmul.msk.f32.gmra.mxu2 %vm264_vm3, %v1195_v19 }
 0x18a   :  { %1000 = vmatmul.msk.f32.gmra.mxu2 %vm264_vm3, %v1170_v15 }
 0x192   :  { %1001 = vmatmul.msk.f32.gmra.mxu2 %vm264_vm3, %v1164_v14 }
 0x19a   :  { %1002 = vmatmul.msk.f32.gmra.mxu2 %vm264_vm3, %v1175_v16 }
 0x1e5   :  { %v301_v52 = vpop.f32.mrf.mxu2 }
 0x1ed   :  { %v304_v53 = vpop.f32.mrf.mxu2 }
 0x1ee   :  { %v305_v47 = vadd.f32 %v304_v53, %v1354_v46 }
 0x1f5   :  { %v307_v54 = vpop.f32.mrf.mxu2 }
 0x1f6   :  { %v308_v44 = vadd.f32 %v307_v54, %v1351_v38 }
 0x1fd   :  { %v310_v55 = vpop.f32.mrf.mxu2 }
 0x1fe   :  { %v311_v39 = vadd.f32 %v310_v55, %v1345_v0  ;;  %v302_v55 = vadd.f32 %v301_v52, %v1357_v51 }
 0x200   :  { %v328_v48 = vmul.f32 0.01, %v311_v39 }
 0x202   :  { %v336_v54 = vmax.f32 %v311_v39, %v328_v48 }
 0x205   :  { %v313_v56 = vpop.f32.mrf.mxu2 }
 0x206   :  { %v314_v31 = vadd.f32 %v313_v56, %v1342_v62  ;;  %v327_v56 = vmul.f32 0.01, %v308_v44 }
 0x208   :  { %v329_v36 = vmul.f32 0.01, %v314_v31 }
 0x20d   :  { %v316_v57 = vpop.f32.mrf.mxu2 }
 0x20e   :  { %v317_v11 = vadd.f32 %v316_v57, %v1340_v61  ;;  %v337_v57 = vmax.f32 %v314_v31, %v329_v36  ;;  %v1368_v31 = vpop.permute.xlu2 %344 }
 0x20f   :  { %1573 = vst [vmem:[#allocation13_spill] sm:$0xff] %v1368_v31 }
 0x210   :  { %v330_v42 = vmul.f32 0.01, %v317_v11 }
 0x212   :  { %v338_v49 = vmax.f32 %v317_v11, %v330_v42  ;;  %v1362_v11 = vpop.f32.mrf.mxu3 }
 0x215   :  { %v319_v60 = vpop.f32.mrf.mxu2 }
 0x216   :  { %v320_v63 = vadd.f32 %v319_v60, %v1338_v59  ;;  %v326_v60 = vmul.f32 0.01, %v305_v47 }
 0x218   :  { %v331_v40 = vmul.f32 0.01, %v320_v63 }
 0x21a   :  { %v339_v45 = vmax.f32 %v320_v63, %v331_v40  ;;  %v335_v63 = vmax.f32 %v308_v44, %v327_v56  ;;  %v1364_v52 = vpop.f32.mrf.mxu3 }
 0x21d   :  { %v322_v6 = vpop.f32.mrf.mxu2 }
 0x21e   :  { %v323_v13 = vadd.f32 %v322_v6, %v1336_v58  ;;  %v325_v6 = vmul.f32 0.01, %v302_v55 }
 0x220   :  { %v332_v41 = vmul.f32 0.01, %v323_v13  ;;  %v333_v53 = vmax.f32 %v302_v55, %v325_v6 }
 0x222   :  { %v340_v43 = vmax.f32 %v323_v13, %v332_v41  ;;  %v334_v13 = vmax.f32 %v305_v47, %v326_v60  ;;  %v1366_v40 = vpop.f32.mrf.mxu3  ;;  %v1394_v47 = vpop.permute.xlu0 %421 }
 0x224   :  { %357 = vmatpush.msrb.mxu3 %v340_v43 }
 0x226   :  { %358 = vmatpush.msrb.mxu3 %v339_v45 }
 0x228   :  { %359 = vmatpush.msrb.mxu3 %v338_v49 }
 0x22a   :  { %360 = vmatpush.msrb.mxu3 %v337_v57 }
 0x22c   :  { %361 = vmatpush.msrb.mxu3 %v336_v54 }
 0x22e   :  { %362 = vmatpush.msrb.mxu3 %v335_v63  ;;  %v1397_v63 = vpop.permute.xlu1 %416 }
 0x230   :  { %363 = vmatpush.msrb.mxu3 %v334_v13  ;;  %v1399_v13 = vpop.permute.xlu2 %411 }
 0x232   :  { %364 = vmatpush.msrb.mxu3 %v333_v53 }
 0x233   :  { %1003 = vmatmul.msk.f32.vlgmr.msrb.gmra.mxu3 %vm184_vm1, %v1210_v21 }
 0x2b6   :  { %v366_v41 = vpop.f32.mrf.mxu3 }
 0x2b7   :  { %v367_v39 = vadd.f32 %v366_v41, %v1368_v31  ;;  %v1401_v41 = vpop.permute.xlu0 %406 }
 0x2b9   :  { %v369_v42 = vmul.f32 1.442695, %v367_v39  ;;  %v373_v44 = vrot.slane %v367_v39, 4  ;;  %v1403_v39 = vpop.permute.xlu1 %401 }
 0x2bb   :  { %1057 = vpow2.f32 %v369_v42 }
 0x2bf   :  { %v1411_v37 = vpop.permute.xlu0 %391 }
 0x2c1   :  { %v1058_v43 = vpop.eup %1057  ;;  %v1414_v2 = vpop.permute.xlu1 %386 }
 0x2c2   :  { %v371_v36 = vmul.f32 %v1058_v43, %v1102_v4  ;;  %v1406_v43 = vpop.permute.xlu2 %396 }
 0x2c4   :  { %v1372_v45 = vadd.f32 %v373_v44, %v371_v36 }
 0x2c6   :  { %1004 = vmatpush.msk.msrb.mxu1 %vm281_vm2, %v1372_v45  ;;  %1050 = vmatpush.msk.msrb.mxu2 %vm281_vm2, %v1372_v45 }
 0x2c7   :  { %1005 = vmatmul.msk.f32.vlgmr.msrb.gmra.mxu1 %vm264_vm3, %v1265_v29  ;;  %1012 = vmatmul.msk.f32.vlgmr.msrb.gmra.mxu2 %vm264_vm3, %v1235_v25 }
 0x2cf   :  { %1006 = vmatmul.msk.f32.gmra.mxu1 %vm264_vm3, %v1270_v30 }
 0x2d7   :  { %1007 = vmatmul.msk.f32.gmra.mxu1 %vm264_vm3, %v1250_v27 }
 0x2df   :  { %1008 = vmatmul.msk.f32.gmra.mxu1 %vm264_vm3, %v1245_v26 }
 0x2e7   :  { %1009 = vmatmul.msk.f32.gmra.mxu1 %vm264_vm3, %v1255_v28 }
 0x2ef   :  { %1010 = vmatmul.msk.f32.gmra.mxu1 %vm264_vm3, %v1230_v24 }
 0x2f7   :  { %1011 = vmatmul.msk.f32.gmra.mxu1 %vm264_vm3, %v1225_v23 }
 0x344   :  { %v460_v4 = vpop.f32.mrf.mxu1 }
 0x34a   :  { %v481_v48 = vpop.f32.mrf.mxu2 }
 0x34b   :  { %v482_v49 = vadd.f32 %v481_v48, %v1394_v47 }
 0x34c   :  { %v463_v55 = vpop.f32.mrf.mxu1 }
 0x34d   :  { %v491_v56 = vmul.f32 0.01, %v482_v49 }
 0x34f   :  { %v499_v57 = vmax.f32 %v482_v49, %v491_v56 }
 0x351   :  { %516 = vmatpush.msra.mxu3 %v499_v57 }
 0x354   :  { %v466_v60 = vpop.f32.mrf.mxu1 }
 0x355   :  { %v467_v12 = vadd.f32 %v466_v60, %v1406_v43 }
 0x35c   :  { %v469_v54 = vpop.f32.mrf.mxu1 }
 0x35d   :  { %v470_v49 = vadd.f32 %v469_v54, %v1403_v39  ;;  %v82_v54 = vpop.permute.xlu2 %81 }
 0x35f   :  { %v487_v7 = vmul.f32 0.01, %v470_v49 }
 0x361   :  { %v495_v5 = vmax.f32 %v470_v49, %v487_v7 }
 0x364   :  { %v472_v6 = vpop.f32.mrf.mxu1 }
 0x365   :  { %v473_v36 = vadd.f32 %v472_v6, %v1401_v41  ;;  %v461_v6 = vadd.f32 %v460_v4, %v1414_v2  ;;  %v150_v4 = vpop.f32.mrf.mxu0  ;;  %v67_v7 = vpop.permute.xlu2 %66 }
 0x367   :  { %v488_v1 = vmul.f32 0.01, %v473_v36  ;;  %v484_v31 = vmul.f32 0.01, %v461_v6 }
 0x369   :  { %v496_v9 = vmax.f32 %v473_v36, %v488_v1 }
 0x36c   :  { %v475_v53 = vpop.f32.mrf.mxu1 }
 0x36d   :  { %v476_v42 = vadd.f32 %v475_v53, %v1399_v13  ;;  %v464_v53 = vadd.f32 %v463_v55, %v1411_v37  ;;  %v72_v55 = vpop.permute.xlu1 %71 }
 0x36f   :  { %v489_v56 = vmul.f32 0.01, %v476_v42  ;;  %v485_v10 = vmul.f32 0.01, %v464_v53 }
 0x371   :  { %v497_v3 = vmax.f32 %v476_v42, %v489_v56  ;;  %v493_v21 = vmax.f32 %v464_v53, %v485_v10  ;;  %v492_v42 = vmax.f32 %v461_v6, %v484_v31 }
 0x374   :  { %v478_v44 = vpop.f32.mrf.mxu1 }
 0x375   :  { %v479_v48 = vadd.f32 %v478_v44, %v1397_v63  ;;  %v486_v44 = vmul.f32 0.01, %v467_v12  ;;  %v544_v53 = vpop.permute.xlu1 %543 }
 0x377   :  { %v490_v57 = vmul.f32 0.01, %v479_v48  ;;  %v494_v60 = vmax.f32 %v467_v12, %v486_v44 }
 0x379   :  { %v498_v8 = vmax.f32 %v479_v48, %v490_v57  ;;  %v77_v48 = vpop.permute.xlu0 %76  ;;  %v160_v57 = vadd.f32 %v1366_v40, %v82_v54 }
 0x37b   :  { %517 = vmatpush.msra.mxu3 %v498_v8  ;;  %v157_v8 = vadd.f32 %v1364_v52, %v77_v48  ;;  %v538_v1 = vmax.f32 %v160_v57, 0.0 }
 0x37d   :  { %518 = vmatpush.msra.mxu3 %v497_v3  ;;  %v154_v3 = vadd.f32 %v1362_v11, %v72_v55 }
 0x37f   :  { %519 = vmatpush.msra.mxu3 %v496_v9  ;;  %v151_v9 = vadd.f32 %v150_v4, %v67_v7  ;;  %v536_v12 = vmax.f32 %v154_v3, 0.0 }
 0x381   :  { %520 = vmatpush.msra.mxu3 %v495_v5  ;;  %v537_v5 = vmax.f32 %v157_v8, 0.0  ;;  %v535_v10 = vmax.f32 %v151_v9, 0.0  ;;  %v549_v6 = vpop.permute.xlu0 %548 }
 0x383   :  { %521 = vmatpush.msra.mxu3 %v494_v60 }
 0x385   :  { %522 = vmatpush.msra.mxu3 %v493_v21  ;;  %v1425_v21 = vpop.permute.xlu2 %503 }
 0x387   :  { %523 = vmatpush.msra.mxu3 %v492_v42 }
 0x388   :  { %1013 = vmatmul.msk.f32.vlgmr.msra.gmra.mxu3 %vm184_vm1, %v1286_v33 }
 0x389   :  { %568 = vmatpush.msrb.mxu3 %v538_v1 }
 0x38b   :  { %569 = vmatpush.msrb.mxu3 %v537_v5 }
 0x38d   :  { %570 = vmatpush.msrb.mxu3 %v536_v12 }
 0x38f   :  { %571 = vmatpush.msrb.mxu3 %v535_v10 }
 0x390   :  { %1014 = vmatmul.msk.f32.vlgmr.msrb.gmra.mxu3 %vm551_vm4, %v1281_v32 }
 0x398   :  { %1015 = vmatmul.msk.f32.gmra.mxu3 %vm551_vm4, %v1291_v34 }
 0x40b   :  { %v525_v11 = vpop.f32.mrf.mxu3 }
 0x40c   :  { %v526_v52 = vadd.f32 %v525_v11, %v1425_v21 }
 0x40e   :  { %v528_v40 = vmul.f32 1.442695, %v526_v52 }
 0x410   :  { %1059 = vpow2.f32 %v528_v40 }
 0x413   :  { %v573_v31 = vpop.f32.mrf.mxu3 }
 0x414   :  { %v574_v60 = vadd.f32 %v573_v31, %v544_v53 }
 0x416   :  { %v1060_v36 = vpop.eup %1059  ;;  %v579_v57 = vmax.f32 %v574_v60, 0.0 }
 0x417   :  { %v531_v49 = vrot.slane %v1060_v36, 4 }
 0x419   :  { %v533_v56 = vmul.f32 %v531_v49, %v1316_v50  ;;  %v585_v50 = vpop.permute.xlu0 %584 }
 0x41b   :  { %v534_v44 = vadd.f32 %v533_v56, %v526_v52  ;;  %v576_v54 = vpop.f32.mrf.mxu3 }
 0x41c   :  { %v577_v32 = vadd.f32 %v576_v54, %v549_v6 }
 0x41d   :  { %v610_v34 = vsel %vm281_vm2, %v1372_v45, %v534_v44  ;;  %v611_v45 = vld [vmem:[%s1547_s1 + $0x110] sm:$0xff] }
 0x41e   :  { %v580_v48 = vmax.f32 %v577_v32, 0.0  ;;  %973 = vst [vmem:[%s1549_s2 + $0x8] sm:$0xff] %v610_v34 }
 0x420   :  { %604 = vmatpush.msra.mxu3 %v580_v48 }
 0x422   :  { %605 = vmatpush.msra.mxu3 %v579_v57 }
 0x423   :  { %1016 = vmatmul.msk.f32.vlgmr.msra.gmra.mxu3 %vm587_vm5, %v1299_v35 }
 0x4a6   :  { %v607_v55 = vpop.f32.mrf.mxu3 }
 0x4a7   :  { %v608_v8 = vadd.f32 %v607_v55, %v585_v50 }
 0x4a9   :  { %974 = vst [vmem:[%s1549_s2 + $0x10] sm:$0xff] %v608_v8  ;;  %633 = vmatpush.msrb.mxu3 %v608_v8 }
 0x4ab   :  { %634 = vmatpush.msrb.mxu3 %v610_v34 }
 0x4ac   :  { %1017 = vmatmul.msk.f32.vlgmr.msrb.gmra.mxu3 %vm587_vm5, %v611_v45 }
 0x52f   :  { %v1443_v42 = vpop.f32.mrf.mxu3 }
 0x530   :  { %975 = vst [vmem:[%s1549_s2 + $0x18] sm:$0xff] %v1443_v42  ;;  %1019 = vmatpush.msk.msra.mxu2 %vm281_vm2, %v1443_v42 }
 0x531   :  { %1020 = vmatmul.msk.f32.vlgmr.msra.gmra.mxu2 %vm264_vm3, %v1265_v29 }
 0x539   :  { %1021 = vmatmul.msk.f32.gmra.mxu2 %vm264_vm3, %v1270_v30 }
 0x541   :  { %1022 = vmatmul.msk.f32.gmra.mxu2 %vm264_vm3, %v1250_v27 }
 0x549   :  { %1023 = vmatmul.msk.f32.gmra.mxu2 %vm264_vm3, %v1245_v26  ;;  %v612_v26 = vld [vmem:[%s1547_s1 + $0x118] sm:$0xff] }
 0x54a   :  { %1018 = vmatmul.msk.f32.gmra.mxu3 %vm587_vm5, %v612_v26 }
 0x551   :  { %1024 = vmatmul.msk.f32.gmra.mxu2 %vm264_vm3, %v1255_v28 }
 0x559   :  { %1025 = vmatmul.msk.f32.gmra.mxu2 %vm264_vm3, %v1230_v24 }
 0x561   :  { %1026 = vmatmul.msk.f32.gmra.mxu2 %vm264_vm3, %v1225_v23 }
 0x569   :  { %1027 = vmatmul.msk.f32.gmra.mxu2 %vm264_vm3, %v1235_v25 }
 0x5b4   :  { %v662_v29 = vpop.f32.mrf.mxu2 }
 0x5bc   :  { %v665_v30 = vpop.f32.mrf.mxu2 }
 0x5c4   :  { %v668_v35 = vpop.f32.mrf.mxu2 }
 0x5c5   :  { %v669_v52 = vadd.f32 %v668_v35, %v1406_v43 }
 0x5cc   :  { %v671_v4 = vpop.f32.mrf.mxu2 }
 0x5cd   :  { %v672_v12 = vadd.f32 %v671_v4, %v1403_v39 }
 0x5cf   :  { %v689_v36 = vmul.f32 0.01, %v672_v12 }
 0x5d1   :  { %v697_v53 = vmax.f32 %v672_v12, %v689_v36  ;;  %v1575_v12 = vld [vmem:[#allocation13_spill] sm:$0xff] }
 0x5d2   :  { %v1576_v36 = vld [vmem:[#allocation5_spill] sm:$0xff] }
 0x5d4   :  { %v674_v27 = vpop.f32.mrf.mxu2 }
 0x5d5   :  { %v675_v7 = vadd.f32 %v674_v27, %v1401_v41 }
 0x5d7   :  { %v690_v40 = vmul.f32 0.01, %v675_v7 }
 0x5d9   :  { %v698_v41 = vmax.f32 %v675_v7, %v690_v40 }
 0x5dc   :  { %v677_v28 = vpop.f32.mrf.mxu2 }
 0x5dd   :  { %v678_v23 = vadd.f32 %v677_v28, %v1399_v13  ;;  %v688_v13 = vmul.f32 0.01, %v669_v52 }
 0x5df   :  { %v691_v10 = vmul.f32 0.01, %v678_v23  ;;  %v696_v6 = vmax.f32 %v669_v52, %v688_v13  ;;  %v1579_v13 = vld [vmem:[#allocation4_spill] sm:$0xff] }
 0x5e1   :  { %v699_v49 = vmax.f32 %v678_v23, %v691_v10 }
 0x5e4   :  { %v680_v1 = vpop.f32.mrf.mxu2 }
 0x5e5   :  { %v681_v24 = vadd.f32 %v680_v1, %v1397_v63  ;;  %v666_v63 = vadd.f32 %v665_v30, %v1411_v37  ;;  %v639_v37 = vpop.f32.mrf.mxu3 }
 0x5e6   :  { %976 = vst [vmem:[%s1549_s2 + $0x20] sm:$0xff] %v639_v37 }
 0x5e7   :  { %v692_v5 = vmul.f32 0.01, %v681_v24  ;;  %v687_v56 = vmul.f32 0.01, %v666_v63 }
 0x5e9   :  { %v700_v31 = vmax.f32 %v681_v24, %v692_v5  ;;  %v695_v43 = vmax.f32 %v666_v63, %v687_v56  ;;  %v1582_v56 = vld [vmem:[#allocation7_spill] sm:$0xff] }
 0x5ec   :  { %v683_v3 = vpop.f32.mrf.mxu2 }
 0x5ed   :  { %v684_v25 = vadd.f32 %v683_v3, %v1394_v47  ;;  %v663_v47 = vadd.f32 %v662_v29, %v1414_v2 }
 0x5ef   :  { %v693_v9 = vmul.f32 0.01, %v684_v25  ;;  %v686_v39 = vmul.f32 0.01, %v663_v47 }
 0x5f1   :  { %v701_v11 = vmax.f32 %v684_v25, %v693_v9  ;;  %v694_v44 = vmax.f32 %v663_v47, %v686_v39  ;;  %v1578_v47 = vld [vmem:[#allocation8_spill] sm:$0xff] }
 0x5f3   :  { %710 = vmatpush.msra.mxu3 %v701_v11 }
 0x5f5   :  { %711 = vmatpush.msra.mxu3 %v700_v31 }
 0x5f7   :  { %712 = vmatpush.msra.mxu3 %v699_v49  ;;  %v1577_v49 = vld [vmem:[#allocation9_spill] sm:$0xff] }
 0x5f9   :  { %713 = vmatpush.msra.mxu3 %v698_v41  ;;  %v1580_v41 = vld [vmem:[#allocation6_spill] sm:$0xff] }
 0x5fb   :  { %714 = vmatpush.msra.mxu3 %v697_v53  ;;  %v1583_v53 = vld [vmem:[#allocation2_spill] sm:$0xff] }
 0x5fd   :  { %715 = vmatpush.msra.mxu3 %v696_v6 }
 0x5ff   :  { %716 = vmatpush.msra.mxu3 %v695_v43 }
 0x601   :  { %717 = vmatpush.msra.mxu3 %v694_v44 }
 0x602   :  { %1028 = vmatmul.msk.f32.vlgmr.msra.gmra.mxu3 %vm184_vm1, %v1286_v33 }
 0x685   :  { %v719_v2 = vpop.f32.mrf.mxu3 }
 0x686   :  { %v720_v54 = vadd.f32 %v719_v2, %v1425_v21 }
 0x688   :  { %v723_v60 = vsub.f32 0.0, %v720_v54  ;;  %v722_v48 = vsub.f32 %v1443_v42, %v720_v54  ;;  %v865_v54 = vpop.permute.xlu1 %864 }
 0x68a   :  { %v724_v32 = vmul.f32 1.442695, %v723_v60  ;;  %v860_v60 = vpop.permute.xlu2 %859 }
 0x68c   :  { %1061 = vpow2.f32 %v724_v32 }
 0x692   :  { %v1062_v34 = vpop.eup %1061 }
 0x693   :  { %v727_v57 = vrot.slane %v1062_v34, 4  ;;  %v855_v34 = vpop.permute.xlu0 %854 }
 0x695   :  { %v1486_v50 = vmul.f32 %v727_v57, %v722_v48  ;;  %v850_v48 = vpop.permute.xlu1 %849 }
 0x697   :  { %v731_v55 = vrot.slane %v1486_v50, 4 }
 0x699   :  { %1029 = vmatpush.msk.msra.mxu1 %vm281_vm2, %v731_v55  ;;  %v845_v55 = vpop.permute.xlu2 %844 }
 0x69a   :  { %1030 = vmatmul.msk.f32.vlgmr.msra.gmra.mxu1 %vm264_vm3, %v1205_v20 }
 0x6a2   :  { %1031 = vmatmul.msk.f32.gmra.mxu1 %vm264_vm3, %v1215_v22 }
 0x6aa   :  { %1032 = vmatmul.msk.f32.gmra.mxu1 %vm264_vm3, %v1190_v18 }
 0x6b2   :  { %1033 = vmatmul.msk.f32.gmra.mxu1 %vm264_vm3, %v1185_v17 }
 0x6ba   :  { %1034 = vmatmul.msk.f32.gmra.mxu1 %vm264_vm3, %v1195_v19 }
 0x6c2   :  { %1035 = vmatmul.msk.f32.gmra.mxu1 %vm264_vm3, %v1170_v15 }
 0x6ca   :  { %1036 = vmatmul.msk.f32.gmra.mxu1 %vm264_vm3, %v1164_v14 }
 0x6d2   :  { %1037 = vmatmul.msk.f32.gmra.mxu1 %vm264_vm3, %v1175_v16 }
 0x717   :  { %v751_v20 = vpop.f32.mrf.mxu1 }
 0x71f   :  { %v754_v22 = vpop.f32.mrf.mxu1 }
 0x727   :  { %v757_v33 = vpop.f32.mrf.mxu1 }
 0x728   :  { %v758_v26 = vadd.f32 %v757_v33, %v1351_v38 }
 0x72f   :  { %v760_v21 = vpop.f32.mrf.mxu1 }
 0x730   :  { %v761_v16 = vadd.f32 %v760_v21, %v1345_v0 }
 0x732   :  { %v778_v24 = vmul.f32 0.01, %v761_v16 }
 0x734   :  { %v786_v25 = vmax.f32 %v761_v16, %v778_v24 }
 0x737   :  { %v763_v18 = vpop.f32.mrf.mxu1 }
 0x738   :  { %v764_v30 = vadd.f32 %v763_v18, %v1342_v62 }
 0x73a   :  { %v779_v28 = vmul.f32 0.01, %v764_v30 }
 0x73c   :  { %v787_v62 = vmax.f32 %v764_v30, %v779_v28 }
 0x73f   :  { %v766_v8 = vpop.f32.mrf.mxu1 }
 0x740   :  { %v767_v19 = vadd.f32 %v766_v8, %v1340_v61  ;;  %v777_v61 = vmul.f32 0.01, %v758_v26 }
 0x742   :  { %v780_v4 = vmul.f32 0.01, %v767_v19  ;;  %v785_v7 = vmax.f32 %v758_v26, %v777_v61  ;;  %v830_v26 = vpop.permute.xlu2 %829 }
 0x744   :  { %v788_v3 = vmax.f32 %v767_v19, %v780_v4  ;;  %v840_v19 = vpop.permute.xlu0 %839 }
 0x747   :  { %v769_v45 = vpop.f32.mrf.mxu1 }
 0x748   :  { %v770_v17 = vadd.f32 %v769_v45, %v1338_v59  ;;  %v755_v59 = vadd.f32 %v754_v22, %v1354_v46  ;;  %v1574_v46 = vld [vmem:[#allocation11_spill] sm:$0xff] }
 0x74a   :  { %v781_v14 = vmul.f32 0.01, %v770_v17  ;;  %v776_v23 = vmul.f32 0.01, %v755_v59 }
 0x74c   :  { %v789_v1 = vmax.f32 %v770_v17, %v781_v14  ;;  %v784_v38 = vmax.f32 %v755_v59, %v776_v23 }
 0x74f   :  { %v772_v29 = vpop.f32.mrf.mxu1 }
 0x750   :  { %v773_v15 = vadd.f32 %v772_v29, %v1336_v58  ;;  %v752_v58 = vadd.f32 %v751_v20, %v1357_v51 }
 0x752   :  { %v782_v35 = vmul.f32 0.01, %v773_v15  ;;  %v775_v0 = vmul.f32 0.01, %v752_v58 }
 0x754   :  { %v790_v27 = vmax.f32 %v773_v15, %v782_v35  ;;  %v783_v5 = vmax.f32 %v752_v58, %v775_v0  ;;  %v835_v35 = vpop.permute.xlu1 %834 }
 0x756   :  { %799 = vmatpush.msrb.mxu3 %v790_v27 }
 0x758   :  { %800 = vmatpush.msrb.mxu3 %v789_v1 }
 0x75a   :  { %801 = vmatpush.msrb.mxu3 %v788_v3 }
 0x75c   :  { %802 = vmatpush.msrb.mxu3 %v787_v62 }
 0x75e   :  { %803 = vmatpush.msrb.mxu3 %v786_v25  ;;  %v1584_v25 = vld [vmem:[#allocation10_spill] sm:$0xff] }
 0x760   :  { %804 = vmatpush.msrb.mxu3 %v785_v7  ;;  %v1585_v7 = vld [vmem:[#allocation12_spill] sm:$0xff] }
 0x762   :  { %805 = vmatpush.msrb.mxu3 %v784_v38 }
 0x764   :  { %806 = vmatpush.msrb.mxu3 %v783_v5 }
 0x765   :  { %1038 = vmatmul.msk.f32.vlgmr.msrb.gmra.mxu3 %vm184_vm1, %v1574_v46 }
 0x7e8   :  { %v808_v9 = vpop.f32.mrf.mxu3 }
 0x7e9   :  { %v809_v51 = vadd.f32 %v808_v9, %v1575_v12 }
 0x7eb   :  { %v815_v10 = vsub.f32 0.0, %v809_v51  ;;  %v812_v52 = vrot.slane %v809_v51, 4 }
 0x7ed   :  { %v816_v11 = vmul.f32 1.442695, %v815_v10  ;;  %v814_v40 = vsub.f32 %v1443_v42, %v812_v52  ;;  %v1581_v42 = vld [vmem:[#allocation3_spill] sm:$0xff] }
 0x7ef   :  { %1063 = vpow2.f32 %v816_v11 }
 0x7f5   :  { %v1064_v31 = vpop.eup %1063 }
 0x7f6   :  { %v1518_v63 = vmul.f32 %v1064_v31, %v814_v40 }
 0x7f8   :  { %1039 = vmatpush.msk.msrb.mxu0 %vm281_vm2, %v1518_v63 }
 0x7f9   :  { %1040 = vmatmul.msk.f32.vlgmr.msrb.gmra.mxu0 %vm264_vm3, %v1576_v36 }
 0x801   :  { %1041 = vmatmul.msk.f32.gmra.mxu0 %vm264_vm3, %v1577_v49 }
 0x809   :  { %1042 = vmatmul.msk.f32.gmra.mxu0 %vm264_vm3, %v1578_v47 }
 0x811   :  { %1043 = vmatmul.msk.f32.gmra.mxu0 %vm264_vm3, %v1579_v13 }
 0x819   :  { %1044 = vmatmul.msk.f32.gmra.mxu0 %vm264_vm3, %v1580_v41 }
 0x821   :  { %1045 = vmatmul.msk.f32.gmra.mxu0 %vm264_vm3, %v1581_v42 }
 0x829   :  { %1046 = vmatmul.msk.f32.gmra.mxu0 %vm264_vm3, %v1582_v56 }
 0x831   :  { %1047 = vmatmul.msk.f32.gmra.mxu0 %vm264_vm3, %v1583_v53 }
 0x876   :  { %v903_v39 = vpop.f32.mrf.mxu0 }
 0x877   :  { %v904_v28 = vadd.f32 %v903_v39, %v830_v26 }
 0x879   :  { %v927_v58 = vmul.f32 0.01, %v904_v28 }
 0x87b   :  { %v935_v23 = vmax.f32 %v904_v28, %v927_v58 }
 0x87e   :  { %v906_v6 = vpop.f32.mrf.mxu0 }
 0x87f   :  { %v907_v16 = vadd.f32 %v906_v6, %v835_v35 }
 0x881   :  { %v928_v24 = vmul.f32 0.01, %v907_v16 }
 0x883   :  { %v936_v62 = vmax.f32 %v907_v16, %v928_v24 }
 0x886   :  { %v909_v43 = vpop.f32.mrf.mxu0 }
 0x887   :  { %v910_v15 = vadd.f32 %v909_v43, %v840_v19 }
 0x889   :  { %v929_v1 = vmul.f32 0.01, %v910_v15 }
 0x88b   :  { %v937_v61 = vmax.f32 %v910_v15, %v929_v1 }
 0x88e   :  { %v912_v44 = vpop.f32.mrf.mxu0 }
 0x88f   :  { %v913_v45 = vadd.f32 %v912_v44, %v845_v55 }
 0x891   :  { %v930_v4 = vmul.f32 0.01, %v913_v45 }
 0x893   :  { %v938_v3 = vmax.f32 %v913_v45, %v930_v4 }
 0x896   :  { %v915_v37 = vpop.f32.mrf.mxu0 }
 0x897   :  { %v916_v21 = vadd.f32 %v915_v37, %v850_v48 }
 0x899   :  { %v931_v30 = vmul.f32 0.01, %v916_v21 }
 0x89b   :  { %v939_v59 = vmax.f32 %v916_v21, %v931_v30 }
 0x89e   :  { %v918_v2 = vpop.f32.mrf.mxu0 }
 0x89f   :  { %v919_v22 = vadd.f32 %v918_v2, %v855_v34 }
 0x8a1   :  { %v932_v17 = vmul.f32 0.01, %v919_v22 }
 0x8a3   :  { %v940_v27 = vmax.f32 %v919_v22, %v932_v17 }
 0x8a6   :  { %v921_v32 = vpop.f32.mrf.mxu0 }
 0x8a7   :  { %v922_v57 = vadd.f32 %v921_v32, %v860_v60 }
 0x8a9   :  { %v933_v18 = vmul.f32 0.01, %v922_v57 }
 0x8ab   :  { %v941_v14 = vmax.f32 %v922_v57, %v933_v18 }
 0x8ae   :  { %v924_v20 = vpop.f32.mrf.mxu0 }
 0x8af   :  { %v925_v33 = vadd.f32 %v924_v20, %v865_v54 }
 0x8b1   :  { %v934_v8 = vmul.f32 0.01, %v925_v33 }
 0x8b3   :  { %v942_v29 = vmax.f32 %v925_v33, %v934_v8 }
 0x8b5   :  { %951 = vmatpush.msra.mxu3 %v942_v29 }
 0x8b7   :  { %952 = vmatpush.msra.mxu3 %v941_v14 }
 0x8b9   :  { %953 = vmatpush.msra.mxu3 %v940_v27 }
 0x8bb   :  { %954 = vmatpush.msra.mxu3 %v939_v59 }
 0x8bd   :  { %955 = vmatpush.msra.mxu3 %v938_v3 }
 0x8bf   :  { %956 = vmatpush.msra.mxu3 %v937_v61 }
 0x8c1   :  { %957 = vmatpush.msra.mxu3 %v936_v62 }
 0x8c3   :  { %958 = vmatpush.msra.mxu3 %v935_v23 }
 0x8c4   :  { %1048 = vmatmul.msk.f32.vlgmr.msra.gmra.mxu3 %vm184_vm1, %v1584_v25 }
 0x947   :  { %v960_v0 = vpop.f32.mrf.mxu3 }
 0x948   :  { %v961_v38 = vadd.f32 %v960_v0, %v1585_v7 }
 0x94a   :  { %v964_v5 = vsub.f32 0.0, %v961_v38  ;;  %v963_v12 = vsub.f32 %v1486_v50, %v961_v38 }
 0x94c   :  { %v965_v46 = vmul.f32 1.442695, %v964_v5 }
 0x94e   :  { %1065 = vpow2.f32 %v965_v46 }
 0x954   :  { %v1066_v9 = vpop.eup %1065 }
 0x955   :  { %v968_v51 = vrot.slane %v1066_v9, 4 }
 0x957   :  { %v970_v10 = vmul.f32 %v968_v51, %v963_v12 }
 0x959   :  { %v971_v11 = vsel %vm281_vm2, %v1518_v63, %v970_v10 }
 0x95a   :  { %972 = vst [vmem:[%s1549_s2] sm:$0xff] %v971_v11 }

</bundles_post_ra>
